<compile_context>
chip_gen: v5e
topology: v5e:2x2
jax: 0.10.0
libtpu: 0.0.40
codegen_flags: <defaults>
</compile_context>

<pallas_src>
import jax
import jax.numpy as jnp
from jax import lax
from jax.experimental import pallas as pl
from jax.experimental.pallas import tpu as pltpu

N_EMBD = 384       # n_embd from the module
BLOCK_SIZE = 64    # block_size from the module (max causal context)
HEAD_SIZE = 64     # head_size = n_embd // n_head (n_head = 6) in the project


def _round_up(x, m):
    return -(-x // m) * m


# ---------------------------------------------------------------------------
# One-time (init-time) weight preparation -- hoisted out of the hot path.
# ---------------------------------------------------------------------------
def prepare_head_weights(w_q, w_k, w_v):
    """Fold the softmax scale into w_q, pad q/k to 128-lane tiles, fuse to one
    bf16 (C, 2*qk_w + hs) matrix.  Call once at parameter-init time."""
    C, hs = w_q.shape
    qk_w = _round_up(hs, 128)
    scale = jnp.float32(hs) ** -0.5
    pad = jnp.zeros((C, qk_w - hs), dtype=jnp.float32)
    w = jnp.concatenate(
        [w_q.astype(jnp.float32) * scale, pad,      # scaled q  -> lanes [0, qk_w)
         w_k.astype(jnp.float32), pad,              # k         -> lanes [qk_w, 2*qk_w)
         w_v.astype(jnp.float32)],                  # v         -> lanes [2*qk_w, 2*qk_w+hs)
        axis=-1)
    return w.astype(jnp.bfloat16)


# ---------------------------------------------------------------------------
# Fused kernel: B_blk batch elements per grid step -> full causal attention
# ---------------------------------------------------------------------------
def _head_kernel(x_ref, wqkv_ref, o_ref):
    # x_ref:    (Bb, T, C)        bf16
    # wqkv_ref: (C, 2*qk_w + hs)  bf16  (scaled-q | 0-pad | k | 0-pad | v)
    # o_ref:    (Bb, T, hs)
    Bb, T, C = x_ref.shape
    hs = o_ref.shape[-1]
    wn = wqkv_ref.shape[-1]
    qk_w = (wn - hs) // 2

    # Fused Q/K/V projection over all Bb*T rows: one MXU matmul, f32 accum.
    # T is a multiple of the sublane tile so these reshapes are free.
    x2d = x_ref[...].reshape(Bb * T, C)
    qkv = jnp.dot(x2d, wqkv_ref[...], preferred_element_type=jnp.float32)
    qkv = qkv.reshape(Bb, T, wn)

    # Lane-tile-aligned slices; q/k carry zero-padded columns (harmless in the
    # contraction).  Softmax scale was folded into the q weights at init time.
    q = qkv[..., 0:qk_w].astype(jnp.bfloat16)                    # (Bb, T, qk_w)
    k = qkv[..., qk_w:2 * qk_w].astype(jnp.bfloat16)             # (Bb, T, qk_w)
    v = qkv[..., 2 * qk_w:2 * qk_w + hs].astype(jnp.bfloat16)    # (Bb, T, hs)

    # scores (already scaled): batched NT contraction, no explicit transpose.
    s = jnp.einsum('bqd,bkd->bqk', q, k,
                   preferred_element_type=jnp.float32)           # (Bb, T, T) f32

    # Causal (lower-triangular) mask -- diagonal kept, so softmax stays finite.
    row = lax.broadcasted_iota(jnp.int32, (T, T), 0)
    col = lax.broadcasted_iota(jnp.int32, (T, T), 1)
    s = jnp.where((col <= row)[None], s, -jnp.inf)

    # Numerically-stable softmax; elementwise math stays f32.
    m = jnp.max(s, axis=-1, keepdims=True)                       # (Bb, T, 1)
    e = jnp.exp(s - m)                                           # (Bb, T, T)
    denom = jnp.sum(e, axis=-1, keepdims=True)                   # (Bb, T, 1)

    # attention dropout: identity (eval mode)
    # TODO(synk): training-mode dropout on the attention weights not implemented.

    # out = softmax(s) @ v; normalization folded into one approx EUP reciprocal
    # applied after the p@v matmul (T values instead of T*T divides).
    pv = jnp.einsum('bqk,bkd->bqd', e.astype(jnp.bfloat16), v,
                    preferred_element_type=jnp.float32)          # (Bb, T, hs)
    o_ref[...] = (pv * pl.reciprocal(denom, approx=True)).astype(o_ref.dtype)


# ---------------------------------------------------------------------------
# Wrapper
# ---------------------------------------------------------------------------
def head_attention(x, w_qkv, head_size, *, num_blocks=None, out_dtype=None):
    """x: (B, T, C); w_qkv: output of prepare_head_weights() (init-time prep).

    num_blocks: grid steps over the batch.  Default 2 (one 'parallel' step per
    v7x TensorCore; ~free on 1-TC v5e/v6e).  Use 1 on single-TC parts to put
    the whole batch in one step (max MXU row fill)."""
    B, T, C = x.shape
    hs = head_size
    wn = w_qkv.shape[-1]
    qk_w = (wn - hs) // 2
    out_dtype = x.dtype if out_dtype is None else out_dtype

    if num_blocks is None:
        num_blocks = 2 if (B >= 2 and B % 2 == 0) else 1
    assert B % num_blocks == 0, (B, num_blocks)
    b_blk = B // num_blocks

    # Accept bf16 activations directly (no wrapper cast pass in that case).
    x_bf16 = x if x.dtype == jnp.bfloat16 else x.astype(jnp.bfloat16)

    cost = pl.CostEstimate(
        flops=2 * B * T * C * wn            # fused QKV projection
        + 2 * B * T * T * qk_w              # q @ k^T
        + 2 * B * T * T * hs,               # p @ v
        transcendentals=B * T * T,          # exp
        bytes_accessed=(x_bf16.size * 2 + w_qkv.size * 2
                        + B * T * hs * jnp.dtype(out_dtype).itemsize),
    )

    return pl.pallas_call(
        _head_kernel,
        out_shape=jax.ShapeDtypeStruct((B, T, hs), out_dtype),
        grid_spec=pltpu.PrefetchScalarGridSpec(
            num_scalar_prefetch=0,
            grid=(num_blocks,),
            in_specs=[
                pl.BlockSpec((b_blk, T, C), lambda b: (b, 0, 0)),
                # Constant block index -> fused weight is DMA'd once.
                pl.BlockSpec((C, wn), lambda b: (0, 0)),
            ],
            # Output last dim = hs (module semantics); full-extent block.
            # NOTE: hs=64 < 128 lanes -> masked stores; the real fix is fusing
            # all 6 heads of the layer (last dim 384), out of scope for `Head`.
            out_specs=pl.BlockSpec((b_blk, T, hs), lambda b: (b, 0, 0)),
        ),
        compiler_params=pltpu.CompilerParams(
            dimension_semantics=("parallel",)),
        cost_estimate=cost,
    )(x_bf16, w_qkv)


# ---------------------------------------------------------------------------
# Pure-JAX f32 reference (mirrors the PyTorch forward, eval mode)
# ---------------------------------------------------------------------------
def reference(x, w_q, w_k, w_v):
    B, T, C = x.shape
    q = x @ w_q
    k = x @ w_k
    v = x @ w_v
    wei = (q @ jnp.swapaxes(k, -1, -2)) * (k.shape[-1] ** -0.5)
    mask = jnp.tril(jnp.ones((T, T), dtype=bool))
    wei = jnp.where(mask, wei, -jnp.inf)
    wei = jax.nn.softmax(wei, axis=-1)
    return wei @ v


if __name__ == "__main__":
    B, T = 2, BLOCK_SIZE          # T <= block_size (causal buffer in the module)
    C, hs = N_EMBD, HEAD_SIZE

    key = jax.random.PRNGKey(0)
    kx, kq, kk, kv = jax.random.split(key, 4)

    x = jax.random.normal(kx, (B, T, C), dtype=jnp.float32)
    # nn.Linear(n_embd, head_size, bias=False) weights, pre-transposed (C, hs).
    w_q = jax.random.normal(kq, (C, hs), dtype=jnp.float32) * 0.02
    w_k = jax.random.normal(kk, (C, hs), dtype=jnp.float32) * 0.02
    w_v = jax.random.normal(kv, (C, hs), dtype=jnp.float32) * 0.02

    # Init-time weight prep (done ONCE, outside the per-call hot path).
    w_qkv = jax.block_until_ready(prepare_head_weights(w_q, w_k, w_v))

    out = head_attention(x, w_qkv, hs)
    out = jax.block_until_ready(out)

    ref = reference(x, w_q, w_k, w_v)
    assert out.shape == (B, T, hs), out.shape
    # Tolerance relaxed vs. pure f32: bf16 matmul operands + approx reciprocal.
    assert jnp.allclose(out, ref, atol=2e-2, rtol=2e-2), \
        f"max abs diff = {jnp.max(jnp.abs(out - ref))}"

    print("KERNEL_OK")
</pallas_src>

<mosaic_0001>
module attributes {stable_mosaic.version = 11 : i64} {
  func.func @_head_kernel(%arg0: i32, %arg1: memref<1x64x384xbf16, #tpu.memory_space<vmem>>, %arg2: memref<384x320xbf16, #tpu.memory_space<vmem>>, %arg3: memref<1x64x64xf32, #tpu.memory_space<vmem>>) attributes {dimension_semantics = [#tpu.dimension_semantics<parallel>], iteration_bounds = array<i64: 2>, scalar_prefetch = 0 : i64, scratch_operands = 0 : i64, tpu.core_type = #tpu.core_type<tc>, window_params = [{transform_indices = @transform_0, window_bounds = array<i64: 1, 64, 384>}, {pipeline_mode = #tpu.pipeline_mode<synchronous>, transform_indices = @transform_1, window_bounds = array<i64: 384, 320>}, {transform_indices = @transform_2, window_bounds = array<i64: 1, 64, 64>}]} {
    %c0 = arith.constant 0 : index
    %c0_0 = arith.constant 0 : index
    %c0_1 = arith.constant 0 : index
    %0 = vector.load %arg1[%c0, %c0_0, %c0_1] : memref<1x64x384xbf16, #tpu.memory_space<vmem>>, vector<1x64x384xbf16>
    %1 = vector.shape_cast %0 : vector<1x64x384xbf16> to vector<64x384xbf16>
    %c0_2 = arith.constant 0 : index
    %c0_3 = arith.constant 0 : index
    %2 = vector.load %arg2[%c0_2, %c0_3] : memref<384x320xbf16, #tpu.memory_space<vmem>>, vector<384x320xbf16>
    %cst = arith.constant dense<0.000000e+00> : vector<64x320xf32>
    %3 = tpu.matmul %1, %2, %cst {dimension_numbers = #tpu.dot_dimension_numbers<[1], [0], [0], [1], [0, 0, 1, 1], [], []>} : vector<64x384xbf16>, vector<384x320xbf16>, vector<64x320xf32> -> vector<64x320xf32>
    %4 = vector.shape_cast %3 : vector<64x320xf32> to vector<1x64x320xf32>
    %5 = vector.extract_strided_slice %4 {offsets = [0, 0, 0], sizes = [1, 64, 128], strides = [1, 1, 1]} : vector<1x64x320xf32> to vector<1x64x128xf32>
    %6 = arith.truncf %5 : vector<1x64x128xf32> to vector<1x64x128xbf16>
    %7 = vector.extract_strided_slice %4 {offsets = [0, 0, 128], sizes = [1, 64, 128], strides = [1, 1, 1]} : vector<1x64x320xf32> to vector<1x64x128xf32>
    %8 = arith.truncf %7 : vector<1x64x128xf32> to vector<1x64x128xbf16>
    %9 = vector.extract_strided_slice %4 {offsets = [0, 0, 256], sizes = [1, 64, 64], strides = [1, 1, 1]} : vector<1x64x320xf32> to vector<1x64x64xf32>
    %10 = arith.truncf %9 : vector<1x64x64xf32> to vector<1x64x64xbf16>
    "tpu.trace_start"() <{level = 10 : i32, message = "bqd,bkd->bqk"}> : () -> ()
    %cst_4 = arith.constant dense<0.000000e+00> : vector<1x64x64xf32>
    %11 = tpu.matmul %6, %8, %cst_4 {dimension_numbers = #tpu.dot_dimension_numbers<[2], [2], [1], [1], [0, 0, 0, 1, 1, 1], [0], [0]>} : vector<1x64x128xbf16>, vector<1x64x128xbf16>, vector<1x64x64xf32> -> vector<1x64x64xf32>
    "tpu.trace_stop"() : () -> ()
    %12 = tpu.iota {dimensions = array<i32: 0>} : vector<64x64xi32>
    %13 = tpu.iota {dimensions = array<i32: 1>} : vector<64x64xi32>
    %14 = arith.cmpi sle, %13, %12 : vector<64x64xi32>
    %15 = vector.shape_cast %14 : vector<64x64xi1> to vector<1x64x64xi1>
    %cst_5 = arith.constant 0xFF800000 : f32
    %16 = vector.broadcast %cst_5 : f32 to vector<1x64x64xf32>
    %17 = arith.select %15, %11, %16 : vector<1x64x64xi1>, vector<1x64x64xf32>
    %cst_6 = arith.constant dense<0xFF800000> : vector<1x64xf32>
    %18 = vector.multi_reduction <maximumf>, %17, %cst_6 [2] : vector<1x64x64xf32> to vector<1x64xf32>
    %19 = vector.shape_cast %18 : vector<1x64xf32> to vector<1x64x1xf32>
    %20 = vector.broadcast %19 : vector<1x64x1xf32> to vector<1x64x64xf32>
    %21 = arith.subf %17, %20 : vector<1x64x64xf32>
    %22 = math.exp %21 : vector<1x64x64xf32>
    %cst_7 = arith.constant dense<0.000000e+00> : vector<1x64xf32>
    %23 = vector.multi_reduction <add>, %22, %cst_7 [2] : vector<1x64x64xf32> to vector<1x64xf32>
    %24 = vector.shape_cast %23 : vector<1x64xf32> to vector<1x64x1xf32>
    %25 = arith.truncf %22 : vector<1x64x64xf32> to vector<1x64x64xbf16>
    "tpu.trace_start"() <{level = 10 : i32, message = "bqk,bkd->bqd"}> : () -> ()
    %cst_8 = arith.constant dense<0.000000e+00> : vector<1x64x64xf32>
    %26 = tpu.matmul %25, %10, %cst_8 {dimension_numbers = #tpu.dot_dimension_numbers<[2], [1], [1], [2], [0, 0, 0, 1, 1, 2], [0], [0]>} : vector<1x64x64xbf16>, vector<1x64x64xbf16>, vector<1x64x64xf32> -> vector<1x64x64xf32>
    "tpu.trace_stop"() : () -> ()
    %27 = tpu.reciprocal %24 {approx = true} : vector<1x64x1xf32> -> vector<1x64x1xf32>
    %28 = vector.broadcast %27 : vector<1x64x1xf32> to vector<1x64x64xf32>
    %29 = arith.mulf %26, %28 : vector<1x64x64xf32>
    %c0_9 = arith.constant 0 : index
    %c0_10 = arith.constant 0 : index
    %c0_11 = arith.constant 0 : index
    %30 = vector.load %arg3[%c0_9, %c0_10, %c0_11] : memref<1x64x64xf32, #tpu.memory_space<vmem>>, vector<1x64x64xf32>
    tpu.vector_store %arg3[%c0_9, %c0_10, %c0_11], %29 {strides = array<i32>} : memref<1x64x64xf32, #tpu.memory_space<vmem>>, vector<1x64x64xf32>,
    return
  }
  func.func @transform_0(%arg0: i32) -> (i32, i32, i32) {
    %c0_i32 = arith.constant 0 : i32
    %c0_i32_0 = arith.constant 0 : i32
    %c0_i32_1 = arith.constant 0 : i32
    return %arg0, %c0_i32, %c0_i32_0 : i32, i32, i32
  }
  func.func @transform_1(%arg0: i32) -> (i32, i32) {
    %c0_i32 = arith.constant 0 : i32
    %c0_i32_0 = arith.constant 0 : i32
    %c0_i32_1 = arith.constant 0 : i32
    return %c0_i32, %c0_i32_0 : i32, i32
  }
  func.func @transform_2(%arg0: i32) -> (i32, i32, i32) {
    %c0_i32 = arith.constant 0 : i32
    %c0_i32_0 = arith.constant 0 : i32
    %c0_i32_1 = arith.constant 0 : i32
    return %arg0, %c0_i32, %c0_i32_0 : i32, i32, i32
  }
}

</mosaic_0001>

<bundles_post_ra>
// kernel: tpu_custom_call.1
= control target key start
LH: loop header
LB: loop body
LE: loop exit
PB: predicated region body
PF: predicated region fallthrough
CT: control target
= control target key end

     0   :  { %7 = vsyncpa [#allocation3], 0  ;;  %s2657_s0 = inlined_call_operand.vmem [shape: bf16[2,64,384], index: 0, kind: input, shape index: {}]   ;;  %s2658_s1 = inlined_call_operand.vmem [shape: bf16[384,320], index: 1, kind: input, shape index: {}]   ;;  %s2659_s2 = inlined_call_operand.hbm [shape: f32[2,64,64], index: 2, kind: output, shape index: {}]  }
   0x1   :  { %9 = vsyncpa [#allocation3 + $0x1], 0  ;;  %s1967_s9 = smov 0   ;;  %s1969_s10 = smov 0  }
   0x2   :  { %s1971_s11 = smov 0   ;;  %s1973_s12 = smov 0  }
   0x3 LB: > { %s1988_s13 = sadd.s32 4294967295, %s1948_s12   ;;  %s1360_s14 = sadd.s32 4294967294, %s1948_s12   ;;  %s1948_s12 = sphi %s1973_s12, %s2665_s12   ;;  %s1944_s11 = sphi %s1971_s11, %s2664_s11   ;;  %s1940_s10 = sphi %s1969_s10, %s2663_s10   ;;  %s1936_s9 = sphi %s1967_s9, %s2662_s9  }
   0x4   : > { %s1992_s15 = sadd.s32 1, %s1948_s12   ;;  %s69_s16 = sadd.s32 1, %s1944_s11 }
   0x5   : > { %s66_s17 = ssub.s32 %s1948_s12, %s1992_s15  ;;  %p79_p0 = scmp.ne.s32.totalorder %s1944_s11, %s1940_s10 }
   0x6   : > { %p67_p1 = scmp.eq.s32.totalorder %s66_s17, 0  ;;  %p80_p2 = scmp.eq.s32.totalorder %s1988_s13, 1 }
   0x7   : > { %p85_p3 = scmp.ne.s32.totalorder %s1940_s10, %s1936_s9  ;;  %p86_p4 = scmp.eq.s32.totalorder %s1360_s14, 1 }
   0x8   : > { %s2003_s18 = scalar_select %p67_p1, %s1944_s11, %s69_s16  }
   0x9   : > { %p2005_p5 = por %p80_p2, %p79_p0  ;;  %p2009_p6 = por %p86_p4, %p85_p3 }
   0xa   : > { %p1363_p7 = scmp.ge.s32.totalorder %s1948_s12, 1  ;;  %p115_p8 = scmp.lt.s32.totalorder %s1948_s12, 3 }
   0xc   : > { %p116_p9 = pnand %p1363_p7, %p115_p8 }
   0xd   : > { %p137_p10 = scmp.lt.s32.totalorder (!%p116_p9), %s1988_s13, 1  ;;  %s134_s5 = sand.u32 (!%p116_p9), 1, %s1940_s10  }
   0xe   : > { %119 = sbr.rel (%p116_p9) target bundleno = 788 (0x314), region = 28  ;;  %s1364_s6 = sshll.u32 (!%p116_p9), %s134_s5, 6 }
   0xf   : > { %s2605_s7 = scalar_lea.vmem (!%p116_p9), [#allocation2], %s1364_s6  ;;  %s1906_s28 = scalar_lea.hbm (!%p116_p9), %s2659_s2, 128 }
  0x10   : > { %s1295_s22 = sshll.u32 (!%p116_p9), %s2605_s7, 4  ;;  %s1296_s22 = int_to_ptr.vmem [resolvable:$true] %s1295_s22 }
  0x13   : > { %v1500_v0 = vld [vmem:[%s2658_s1 + $0xa8] sm:$0xf]  ;;  %v1745_v1 = vld [vmem:[%s2658_s1 + $0xb0] sm:$0xf0]  ;;  %v1488_v9 = vld [vmem:[%s2658_s1 + $0x90] sm:$0xf] }
  0x14   : > { %v1596_v2 = vld [vmem:[%s2658_s1 + $0x168] sm:$0xf]  ;;  %v1501_v3 = vor.u32 %v1745_v1, %v1500_v0  ;;  %v1769_v4 = vld [vmem:[%s2658_s1 + $0x170] sm:$0xf0]  ;;  %v1742_v10 = vld [vmem:[%s2658_s1 + $0x98] sm:$0xf0] }
  0x15   : > { %v1692_v5 = vld [vmem:[%s2658_s1 + $0x228] sm:$0xf]  ;;  %v1793_v6 = vld [vmem:[%s2658_s1 + $0x230] sm:$0xf0]  ;;  %v1597_v7 = vor.u32 %v1769_v4, %v1596_v2  ;;  %v1584_v11 = vld [vmem:[%s2658_s1 + $0x150] sm:$0xf]  ;;  %v1489_v12 = vor.u32 %v1742_v10, %v1488_v9 }
  0x16   : > { %v1693_v8 = vor.u32 %v1793_v6, %v1692_v5  ;;  %703 = vmatpush.bf16.msra.mxu0 %v1501_v3  ;;  %v1766_v13 = vld [vmem:[%s2658_s1 + $0x158] sm:$0xf0]  ;;  %v1680_v14 = vld [vmem:[%s2658_s1 + $0x210] sm:$0xf]  ;;  %1796 = vmatpush.bf16.msra.mxu3 %v1501_v3  ;;  %v1476_v18 = vld [vmem:[%s2658_s1 + $0x78] sm:$0xf] }
  0x17   : > { %v1790_v15 = vld [vmem:[%s2658_s1 + $0x218] sm:$0xf0]  ;;  %732 = vmatpush.bf16.msra.mxu1 %v1597_v7  ;;  %v1585_v16 = vor.u32 %v1766_v13, %v1584_v11  ;;  %v1739_v19 = vld [vmem:[%s2658_s1 + $0x80] sm:$0xf0]  ;;  %v1572_v20 = vld [vmem:[%s2658_s1 + $0x138] sm:$0xf] }
  0x18   : > { %761 = vmatpush.bf16.msra.mxu2 %v1693_v8  ;;  %v1681_v17 = vor.u32 %v1790_v15, %v1680_v14  ;;  %v1763_v21 = vld [vmem:[%s2658_s1 + $0x140] sm:$0xf0]  ;;  %v1668_v22 = vld [vmem:[%s2658_s1 + $0x1f8] sm:$0xf]  ;;  %v1477_v24 = vor.u32 %v1739_v19, %v1476_v18  ;;  %v1464_v27 = vld [vmem:[%s2658_s1 + $0x60] sm:$0xf] }
  0x19   : > { %v1787_v23 = vld [vmem:[%s2658_s1 + $0x200] sm:$0xf0]  ;;  %v1573_v25 = vor.u32 %v1763_v21, %v1572_v20  ;;  %v1736_v28 = vld [vmem:[%s2658_s1 + $0x68] sm:$0xf0]  ;;  %v1560_v29 = vld [vmem:[%s2658_s1 + $0x120] sm:$0xf] }
  0x1a   : > { %704 = vmatpush.bf16.msra.mxu0 %v1489_v12  ;;  %1797 = vmatpush.bf16.msra.mxu3 %v1489_v12  ;;  %v1669_v26 = vor.u32 %v1787_v23, %v1668_v22  ;;  %v1760_v30 = vld [vmem:[%s2658_s1 + $0x128] sm:$0xf0]  ;;  %v1656_v31 = vld [vmem:[%s2658_s1 + $0x1e0] sm:$0xf]  ;;  %v1465_v33 = vor.u32 %v1736_v28, %v1464_v27  ;;  %v1452_v36 = vld [vmem:[%s2658_s1 + $0x48] sm:$0xf] }
  0x1b   : > { %733 = vmatpush.bf16.msra.mxu1 %v1585_v16  ;;  %v1784_v32 = vld [vmem:[%s2658_s1 + $0x1e8] sm:$0xf0]  ;;  %v1561_v34 = vor.u32 %v1760_v30, %v1560_v29  ;;  %v1733_v37 = vld [vmem:[%s2658_s1 + $0x50] sm:$0xf0]  ;;  %v1548_v38 = vld [vmem:[%s2658_s1 + $0x108] sm:$0xf] }
  0x1c   : > { %762 = vmatpush.bf16.msra.mxu2 %v1681_v17  ;;  %v1657_v35 = vor.u32 %v1784_v32, %v1656_v31  ;;  %v1757_v39 = vld [vmem:[%s2658_s1 + $0x110] sm:$0xf0]  ;;  %v1644_v40 = vld [vmem:[%s2658_s1 + $0x1c8] sm:$0xf]  ;;  %v1453_v42 = vor.u32 %v1733_v37, %v1452_v36  ;;  %v1440_v43 = vld [vmem:[%s2658_s1 + $0x30] sm:$0xf] }
  0x1d   : > { %v1781_v41 = vld [vmem:[%s2658_s1 + $0x1d0] sm:$0xf0]  ;;  %v1549_v44 = vor.u32 %v1757_v39, %v1548_v38  ;;  %v1730_v46 = vld [vmem:[%s2658_s1 + $0x38] sm:$0xf0]  ;;  %v1536_v47 = vld [vmem:[%s2658_s1 + $0xf0] sm:$0xf] }
  0x1e   : > { %705 = vmatpush.bf16.msra.mxu0 %v1477_v24  ;;  %1798 = vmatpush.bf16.msra.mxu3 %v1477_v24  ;;  %v1645_v45 = vor.u32 %v1781_v41, %v1644_v40  ;;  %v1754_v48 = vld [vmem:[%s2658_s1 + $0xf8] sm:$0xf0]  ;;  %v1632_v49 = vld [vmem:[%s2658_s1 + $0x1b0] sm:$0xf]  ;;  %s138_s8 = scalar_select %p137_p10, %s1988_s13, 1  ;;  %v1441_v51 = vor.u32 %v1730_v46, %v1440_v43  ;;  %vm1092_vm2 = vcmask 523264  }
  0x1f   : > { %734 = vmatpush.bf16.msra.mxu1 %v1573_v25  ;;  %v1778_v50 = vld [vmem:[%s2658_s1 + $0x1b8] sm:$0xf0]  ;;  %v1428_v52 = vld [vmem:[%s2658_s1 + $0x18] sm:$0xf]  ;;  %v1537_v53 = vor.u32 %v1754_v48, %v1536_v47  ;;  %v1727_v55 = vld [vmem:[%s2658_s1 + $0x20] sm:$0xf0] }
  0x20   : > { %763 = vmatpush.bf16.msra.mxu2 %v1669_v26  ;;  %v1633_v54 = vor.u32 %v1778_v50, %v1632_v49  ;;  %v1524_v56 = vld [vmem:[%s2658_s1 + $0xd8] sm:$0xf]  ;;  %s1812_s24 = smul.u32 96, %s138_s8  ;;  %v1751_v57 = vld [vmem:[%s2658_s1 + $0xe0] sm:$0xf0]  ;;  %v1429_v60 = vor.u32 %v1727_v55, %v1428_v52  ;;  %s1795_s8 = sshll.u32 %s1988_s13, 6 }
  0x21   : > { %v1620_v58 = vld [vmem:[%s2658_s1 + $0x198] sm:$0xf]  ;;  %v1775_v59 = vld [vmem:[%s2658_s1 + $0x1a0] sm:$0xf0]  ;;  %v1416_v61 = vld [vmem:[%s2658_s1] sm:$0xf]  ;;  %v1525_v0 = vor.u32 %v1751_v57, %v1524_v56  ;;  %s1294_s21 = scalar_lea.hbm %s2659_s2, %s1795_s8 }
  0x22   : > { %706 = vmatpush.bf16.msra.mxu0 %v1465_v33  ;;  %1799 = vmatpush.bf16.msra.mxu3 %v1465_v33  ;;  %v1724_v62 = vld [vmem:[%s2658_s1 + $0x8] sm:$0xf0]  ;;  %v1512_v63 = vld [vmem:[%s2658_s1 + $0xc0] sm:$0xf]  ;;  %s2155_s17 = scalar_lea.vmem %s2657_s0, %s1812_s24  ;;  %v1621_v1 = vor.u32 %v1775_v59, %v1620_v58  ;;  %v1502_v6 = vld [vmem:[%s2658_s1 + $0xb4] sm:$0xf0] }
  0x23   : > { %735 = vmatpush.bf16.msra.mxu1 %v1561_v34  ;;  %v1748_v2 = vld [vmem:[%s2658_s1 + $0xc8] sm:$0xf0]  ;;  %v1608_v3 = vld [vmem:[%s2658_s1 + $0x180] sm:$0xf]  ;;  %v1598_v10 = vld [vmem:[%s2658_s1 + $0x174] sm:$0xf0]  ;;  %v1417_v11 = vor.u32 %v1724_v62, %v1416_v61 }
  0x24   : > { %764 = vmatpush.bf16.msra.mxu2 %v1657_v35  ;;  %v1772_v4 = vld [vmem:[%s2658_s1 + $0x188] sm:$0xf0]  ;;  %v1368_v8 = vld [vmem:[%s2155_s17] sm:$0xf]  ;;  %v1711_v12 = vld [vmem:[%s2155_s17 + $0x4] sm:$0xf]  ;;  %v1513_v15 = vor.u32 %v1748_v2, %v1512_v63 }
  0x25   : > { %v1744_v5 = vld [vmem:[%s2658_s1 + $0xac] sm:$0xf]  ;;  %v1392_v13 = vld [vmem:[%s2155_s17 + $0x30] sm:$0xf]  ;;  %v1718_v14 = vld [vmem:[%s2155_s17 + $0x38] sm:$0xf0]  ;;  %v1609_v16 = vor.u32 %v1772_v4, %v1608_v3 }
  0x26   : > { %707 = vmatpush.bf16.msra.mxu0 %v1453_v42  ;;  %1800 = vmatpush.bf16.msra.mxu3 %v1453_v42  ;;  %v1768_v7 = vld [vmem:[%s2658_s1 + $0x16c] sm:$0xf]  ;;  %v1370_v17 = vld [vmem:[%s2155_s17 + $0xc] sm:$0xf0]  ;;  %v1376_v18 = vld [vmem:[%s2155_s17 + $0x8] sm:$0xf]  ;;  %v1505_v20 = vor.u32 %v1744_v5, %v1502_v6  ;;  %v2191_v24 = vor.u32 %v1718_v14, %v1392_v13 }
  0x27   : > { %736 = vmatpush.bf16.msra.mxu1 %v1549_v44  ;;  %v1712_v9 = vld [vmem:[%s2155_s17 + $0x8] sm:$0xf0]  ;;  %v1713_v19 = vld [vmem:[%s2155_s17 + $0x10] sm:$0xf0]  ;;  %v1601_v22 = vor.u32 %v1768_v7, %v1598_v10  ;;  %v1490_v25 = vld [vmem:[%s2658_s1 + $0x9c] sm:$0xf0]  ;;  %v2202_v28 = vor.u32 %v1711_v12, %v1370_v17 }
  0x28   : > { %765 = vmatpush.bf16.msra.mxu2 %v1645_v45  ;;  %v1741_v21 = vld [vmem:[%s2658_s1 + $0x94] sm:$0xf]  ;;  %v2189_v23 = vor.u32 %v1712_v9, %v1368_v8  ;;  %v1586_v27 = vld [vmem:[%s2658_s1 + $0x15c] sm:$0xf0]  ;;  %v2204_v29 = vor.u32 %v1713_v19, %v1376_v18  ;;  %v1738_v31 = vld [vmem:[%s2658_s1 + $0x7c] sm:$0xf] }
  0x29   : > { %v1765_v26 = vld [vmem:[%s2658_s1 + $0x154] sm:$0xf]  ;;  %v1493_v30 = vor.u32 %v1741_v21, %v1490_v25  ;;  %v1478_v32 = vld [vmem:[%s2658_s1 + $0x84] sm:$0xf0]  ;;  %v1792_v34 = vld [vmem:[%s2658_s1 + $0x22c] sm:$0xf] }
  0x2a   : > { %708 = vmatpush.bf16.msra.mxu0 %v1441_v51  ;;  %1801 = vmatpush.bf16.msra.mxu3 %v1441_v51  ;;  %v1589_v33 = vor.u32 %v1765_v26, %v1586_v27  ;;  %v1762_v35 = vld [vmem:[%s2658_s1 + $0x13c] sm:$0xf]  ;;  %v1574_v36 = vld [vmem:[%s2658_s1 + $0x144] sm:$0xf0]  ;;  %v1694_v37 = vld [vmem:[%s2658_s1 + $0x234] sm:$0xf0]  ;;  %v1481_v41 = vor.u32 %v1738_v31, %v1478_v32 }
  0x2b   : > { %737 = vmatpush.bf16.msra.mxu1 %v1537_v53  ;;  %v1697_v38 = vor.u32 %v1792_v34, %v1694_v37  ;;  %v1789_v39 = vld [vmem:[%s2658_s1 + $0x214] sm:$0xf]  ;;  %v1682_v40 = vld [vmem:[%s2658_s1 + $0x21c] sm:$0xf0]  ;;  %v1735_v42 = vld [vmem:[%s2658_s1 + $0x64] sm:$0xf]  ;;  %v1577_v43 = vor.u32 %v1762_v35, %v1574_v36 }
  0x2c   : > { %766 = vmatpush.bf16.msra.mxu2 %v1633_v54  ;;  %v1466_v44 = vld [vmem:[%s2658_s1 + $0x6c] sm:$0xf0]  ;;  %v1759_v45 = vld [vmem:[%s2658_s1 + $0x124] sm:$0xf]  ;;  %v1685_v47 = vor.u32 %v1789_v39, %v1682_v40  ;;  %v1786_v48 = vld [vmem:[%s2658_s1 + $0x1fc] sm:$0xf] }
  0x2d   : > { %v1562_v46 = vld [vmem:[%s2658_s1 + $0x12c] sm:$0xf0]  ;;  %v1670_v49 = vld [vmem:[%s2658_s1 + $0x204] sm:$0xf0]  ;;  %v1380_v50 = vld [vmem:[%s2155_s17 + $0x18] sm:$0xf]  ;;  %v1469_v52 = vor.u32 %v1735_v42, %v1466_v44 }
  0x2e   : > { %709 = vmatpush.bf16.msra.mxu0 %v1429_v60  ;;  %1802 = vmatpush.bf16.msra.mxu3 %v1429_v60  ;;  %v1715_v51 = vld [vmem:[%s2155_s17 + $0x20] sm:$0xf0]  ;;  %v1732_v53 = vld [vmem:[%s2658_s1 + $0x4c] sm:$0xf]  ;;  %v1565_v54 = vor.u32 %v1759_v45, %v1562_v46  ;;  %v1454_v55 = vld [vmem:[%s2658_s1 + $0x54] sm:$0xf0]  ;;  %v1673_v58 = vor.u32 %v1786_v48, %v1670_v49 }
  0x2f   : > { %738 = vmatpush.bf16.msra.mxu1 %v1525_v0  ;;  %v1756_v56 = vld [vmem:[%s2658_s1 + $0x10c] sm:$0xf]  ;;  %v1550_v57 = vld [vmem:[%s2658_s1 + $0x114] sm:$0xf0]  ;;  %v1714_v59 = vld [vmem:[%s2155_s17 + $0x1c] sm:$0xf]  ;;  %v2281_v6 = vor.u32 %v1715_v51, %v1380_v50 }
  0x30   : > { %767 = vmatpush.bf16.msra.mxu2 %v1621_v1  ;;  %v1404_v60 = vld [vmem:[%s2155_s17 + $0x48] sm:$0xf]  ;;  %v1721_v61 = vld [vmem:[%s2155_s17 + $0x50] sm:$0xf0]  ;;  %v1388_v63 = vld [vmem:[%s2155_s17 + $0x20] sm:$0xf]  ;;  %v1457_v1 = vor.u32 %v1732_v53, %v1454_v55  ;;  %v1553_v3 = vor.u32 %v1756_v56, %v1550_v57 }
  0x31   : > { %v1382_v62 = vld [vmem:[%s2155_s17 + $0x24] sm:$0xf0]  ;;  %v1716_v0 = vld [vmem:[%s2155_s17 + $0x28] sm:$0xf0]  ;;  %v1729_v2 = vld [vmem:[%s2658_s1 + $0x34] sm:$0xf]  ;;  %v2283_v7 = vor.u32 %v1721_v61, %v1404_v60 }
  0x32   : > { %710 = vmatpush.bf16.msra.mxu0 %v1417_v11  ;;  %1803 = vmatpush.bf16.msra.mxu3 %v1417_v11  ;;  %v1783_v4 = vld [vmem:[%s2658_s1 + $0x1e4] sm:$0xf]  ;;  %v1658_v5 = vld [vmem:[%s2658_s1 + $0x1ec] sm:$0xf0]  ;;  %v1442_v8 = vld [vmem:[%s2658_s1 + $0x3c] sm:$0xf0]  ;;  %v2294_v11 = vor.u32 %v1714_v59, %v1382_v62  ;;  %v2296_v12 = vor.u32 %v1716_v0, %v1388_v63 }
  0x33   : > { %739 = vmatpush.bf16.msra.mxu1 %v1513_v15  ;;  %v1753_v9 = vld [vmem:[%s2658_s1 + $0xf4] sm:$0xf]  ;;  %v1538_v10 = vld [vmem:[%s2658_s1 + $0xfc] sm:$0xf0]  ;;  %v1661_v13 = vor.u32 %v1783_v4, %v1658_v5  ;;  %v1445_v14 = vor.u32 %v1729_v2, %v1442_v8  ;;  %v1726_v15 = vld [vmem:[%s2658_s1 + $0x1c] sm:$0xf] }
  0x34   : > { %768 = vmatpush.bf16.msra.mxu2 %v1609_v16  ;;  %v1541_v16 = vor.u32 %v1753_v9, %v1538_v10  ;;  %v1780_v17 = vld [vmem:[%s2658_s1 + $0x1cc] sm:$0xf]  ;;  %v1646_v18 = vld [vmem:[%s2658_s1 + $0x1d4] sm:$0xf0]  ;;  %v1430_v19 = vld [vmem:[%s2658_s1 + $0x24] sm:$0xf0] }
  0x35   : > { %711 = vmatmul.bf16.vlgmr.msra.gmra.mxu0 %v2189_v23  ;;  %721 = vmatmul.bf16.vlgmr.msra.gmra.mxu3 %v2191_v24  ;;  %v1526_v21 = vld [vmem:[%s2658_s1 + $0xe4] sm:$0xf0]  ;;  %v1433_v25 = vor.u32 %v1726_v15, %v1430_v19  ;;  %v1723_v26 = vld [vmem:[%s2658_s1 + $0x4] sm:$0xf]  ;;  %v1634_v31 = vld [vmem:[%s2658_s1 + $0x1bc] sm:$0xf0] }
  0x36   : > { %790 = vmatpush.bf16.msrb.mxu3 %v1505_v20  ;;  %819 = vmatpush.bf16.msrb.mxu0 %v1601_v22  ;;  %v1750_v20 = vld [vmem:[%s2658_s1 + $0xdc] sm:$0xf]  ;;  %v1649_v22 = vor.u32 %v1780_v17, %v1646_v18  ;;  %v1418_v32 = vld [vmem:[%s2658_s1 + $0xc] sm:$0xf0]  ;;  %v1622_v39 = vld [vmem:[%s2658_s1 + $0x1a4] sm:$0xf0] }
  0x37   : > { %740 = vmatmul.bf16.vlgmr.msra.gmra.mxu1 %v2202_v28  ;;  %769 = vmatmul.bf16.vlgmr.msra.gmra.mxu2 %v2204_v29  ;;  %v1529_v27 = vor.u32 %v1750_v20, %v1526_v21  ;;  %v1514_v34 = vld [vmem:[%s2658_s1 + $0xcc] sm:$0xf0]  ;;  %v1421_v36 = vor.u32 %v1723_v26, %v1418_v32  ;;  %v1717_v40 = vld [vmem:[%s2155_s17 + $0x34] sm:$0xf]  ;;  %v1400_v42 = vld [vmem:[%s2155_s17 + $0x38] sm:$0xf] }
  0x38   : > { %848 = vmatpush.bf16.msrb.mxu1 %v1697_v38  ;;  %v1774_v38 = vld [vmem:[%s2658_s1 + $0x19c] sm:$0xf]  ;;  %v1771_v45 = vld [vmem:[%s2658_s1 + $0x184] sm:$0xf]  ;;  %v1610_v46 = vld [vmem:[%s2658_s1 + $0x18c] sm:$0xf0] }
  0x39   : > { %v1625_v44 = vor.u32 %v1774_v38, %v1622_v39  ;;  %v1613_v49 = vor.u32 %v1771_v45, %v1610_v46  ;;  %v1720_v50 = vld [vmem:[%s2155_s17 + $0x4c] sm:$0xf]  ;;  %v1406_v51 = vld [vmem:[%s2155_s17 + $0x54] sm:$0xf0]  ;;  %v1722_v53 = vld [vmem:[%s2155_s17 + $0x58] sm:$0xf0] }
  0x3a   : > { %791 = vmatpush.bf16.msrb.mxu3 %v1493_v30  ;;  %820 = vmatpush.bf16.msrb.mxu0 %v1589_v33  ;;  %v1777_v30 = vld [vmem:[%s2658_s1 + $0x1b4] sm:$0xf]  ;;  %v1747_v33 = vld [vmem:[%s2658_s1 + $0xc4] sm:$0xf]  ;;  %v1508_v56 = vld [vmem:[%s2658_s1 + $0xb0] sm:$0xf] }
  0x3b   : > { %v1637_v35 = vor.u32 %v1777_v30, %v1634_v31  ;;  %v1517_v37 = vor.u32 %v1747_v33, %v1514_v34  ;;  %v1746_v57 = vld [vmem:[%s2658_s1 + $0xb8] sm:$0xf0]  ;;  %v1496_v62 = vld [vmem:[%s2658_s1 + $0x98] sm:$0xf]  ;;  %v1743_v63 = vld [vmem:[%s2658_s1 + $0xa0] sm:$0xf0] }
  0x3c   : > { %849 = vmatpush.bf16.msrb.mxu1 %v1685_v47  ;;  %v1509_v59 = vor.u32 %v1746_v57, %v1508_v56  ;;  %v1770_v60 = vld [vmem:[%s2658_s1 + $0x178] sm:$0xf0]  ;;  %v1592_v0 = vld [vmem:[%s2658_s1 + $0x158] sm:$0xf]  ;;  %v1767_v2 = vld [vmem:[%s2658_s1 + $0x160] sm:$0xf0] }
  0x3d   : > { %v1484_v4 = vld [vmem:[%s2658_s1 + $0x80] sm:$0xf]  ;;  %v1740_v5 = vld [vmem:[%s2658_s1 + $0x88] sm:$0xf0]  ;;  %v1472_v17 = vld [vmem:[%s2658_s1 + $0x68] sm:$0xf] }
  0x3e   : > { %792 = vmatpush.bf16.msrb.mxu3 %v1481_v41  ;;  %821 = vmatpush.bf16.msrb.mxu0 %v1577_v43  ;;  %v1394_v41 = vld [vmem:[%s2155_s17 + $0x3c] sm:$0xf0]  ;;  %v1719_v43 = vld [vmem:[%s2155_s17 + $0x40] sm:$0xf0]  ;;  %v1485_v9 = vor.u32 %v1740_v5, %v1484_v4  ;;  %v1764_v10 = vld [vmem:[%s2658_s1 + $0x148] sm:$0xf0] }
  0x3f   : > { %v2354_v47 = vor.u32 %v1717_v40, %v1394_v41  ;;  %v2356_v48 = vor.u32 %v1719_v43, %v1400_v42  ;;  %877 = vmatpush.bf16.msrb.mxu2 %v1509_v59  ;;  %v1580_v8 = vld [vmem:[%s2658_s1 + $0x140] sm:$0xf]  ;;  %v1737_v18 = vld [vmem:[%s2658_s1 + $0x70] sm:$0xf0]  ;;  %v1568_v19 = vld [vmem:[%s2658_s1 + $0x128] sm:$0xf] }
  0x40   : > { %850 = vmatpush.bf16.msrb.mxu1 %v1673_v58  ;;  %v1604_v58 = vld [vmem:[%s2658_s1 + $0x170] sm:$0xf]  ;;  %v1581_v15 = vor.u32 %v1764_v10, %v1580_v8  ;;  %v1473_v20 = vor.u32 %v1737_v18, %v1472_v17  ;;  %v1761_v21 = vld [vmem:[%s2658_s1 + $0x130] sm:$0xf0]  ;;  %v1734_v31 = vld [vmem:[%s2658_s1 + $0x58] sm:$0xf0] }
  0x41   : > { %v1605_v61 = vor.u32 %v1770_v60, %v1604_v58  ;;  %v1569_v26 = vor.u32 %v1761_v21, %v1568_v19  ;;  %v1460_v30 = vld [vmem:[%s2658_s1 + $0x50] sm:$0xf]  ;;  %v1758_v34 = vld [vmem:[%s2658_s1 + $0x118] sm:$0xf0]  ;;  %v1448_v39 = vld [vmem:[%s2658_s1 + $0x38] sm:$0xf] }
  0x42   : > { %793 = vmatpush.bf16.msrb.mxu3 %v1469_v52  ;;  %822 = vmatpush.bf16.msrb.mxu0 %v1565_v54  ;;  %v1412_v52 = vld [vmem:[%s2155_s17 + $0x50] sm:$0xf]  ;;  %v2366_v54 = vor.u32 %v1720_v50, %v1406_v51  ;;  %v1461_v33 = vor.u32 %v1734_v31, %v1460_v30  ;;  %v1731_v40 = vld [vmem:[%s2658_s1 + $0x40] sm:$0xf0]  ;;  %v1544_v41 = vld [vmem:[%s2658_s1 + $0xf8] sm:$0xf] }
  0x43   : > { %v2368_v55 = vor.u32 %v1722_v53, %v1412_v52  ;;  %v1556_v32 = vld [vmem:[%s2658_s1 + $0x110] sm:$0xf]  ;;  %v1449_v42 = vor.u32 %v1731_v40, %v1448_v39  ;;  %v1755_v43 = vld [vmem:[%s2658_s1 + $0x100] sm:$0xf0]  ;;  %v1785_v45 = vld [vmem:[%s2658_s1 + $0x1f0] sm:$0xf0] }
  0x44   : > { %851 = vmatpush.bf16.msrb.mxu1 %v1661_v13  ;;  %v1700_v13 = vld [vmem:[%s2658_s1 + $0x230] sm:$0xf]  ;;  %v1545_v46 = vor.u32 %v1755_v43, %v1544_v41  ;;  %v1436_v50 = vld [vmem:[%s2658_s1 + $0x20] sm:$0xf]  ;;  %v1728_v51 = vld [vmem:[%s2658_s1 + $0x28] sm:$0xf0] }
  0x45   : > { %716 = vmatmul.bf16.gmra.mxu0 %v2281_v6  ;;  %726 = vmatmul.bf16.gmra.mxu3 %v2283_v7  ;;  %v1532_v52 = vld [vmem:[%s2658_s1 + $0xe0] sm:$0xf]  ;;  %v1437_v53 = vor.u32 %v1728_v51, %v1436_v50  ;;  %v1752_v56 = vld [vmem:[%s2658_s1 + $0xe8] sm:$0xf0]  ;;  %v1652_v57 = vld [vmem:[%s2658_s1 + $0x1d0] sm:$0xf] }
  0x46   : > { %794 = vmatpush.bf16.msrb.mxu3 %v1457_v1  ;;  %823 = vmatpush.bf16.msrb.mxu0 %v1553_v3  ;;  %v1497_v1 = vor.u32 %v1743_v63, %v1496_v62  ;;  %v1593_v3 = vor.u32 %v1767_v2, %v1592_v0  ;;  %v1782_v58 = vld [vmem:[%s2658_s1 + $0x1d8] sm:$0xf0]  ;;  %v1533_v59 = vor.u32 %v1752_v56, %v1532_v52  ;;  %v1725_v62 = vld [vmem:[%s2658_s1 + $0x10] sm:$0xf0]  ;;  %v1520_v63 = vld [vmem:[%s2658_s1 + $0xc8] sm:$0xf] }
  0x47   : > { %745 = vmatmul.bf16.gmra.mxu1 %v2294_v11  ;;  %774 = vmatmul.bf16.gmra.mxu2 %v2296_v12  ;;  %v1653_v60 = vor.u32 %v1782_v58, %v1652_v57  ;;  %v1640_v2 = vld [vmem:[%s2658_s1 + $0x1b8] sm:$0xf]  ;;  %v1628_v8 = vld [vmem:[%s2658_s1 + $0x1a0] sm:$0xf]  ;;  %s1297_s23 = sshll.u32 %s1294_s21, 4  ;;  %s1283_s13 = scalar_lea.sflag [#allocation3], %s134_s5  ;;  %s1298_s23 = int_to_ptr.hbm [resolvable:$true] %s1297_s23 }
  0x48   : > { %852 = vmatpush.bf16.msrb.mxu1 %v1649_v22  ;;  %878 = vmatpush.bf16.msrb.mxu2 %v1497_v1  ;;  %v1688_v22 = vld [vmem:[%s2658_s1 + $0x218] sm:$0xf]  ;;  %v1749_v1 = vld [vmem:[%s2658_s1 + $0xd0] sm:$0xf0]  ;;  %s1900_s25 = sshra.s32 %s1298_s23, 4  ;;  %s1901_s25 = int_to_ptr.hbm [resolvable:$true] %s1900_s25 }
  0x49   : > { %v1521_v4 = vor.u32 %v1749_v1, %v1520_v63  ;;  %s1902_s24 = scalar_lea.hbm %s1901_s25, 64  ;;  %p1907_p0 = scmp.lt.s32.totalorder %s1901_s25, %s2659_s2 }
  0x4a   : > { %795 = vmatpush.bf16.msrb.mxu3 %v1445_v14  ;;  %824 = vmatpush.bf16.msrb.mxu0 %v1541_v16  ;;  %v1794_v14 = vld [vmem:[%s2658_s1 + $0x238] sm:$0xf0]  ;;  %p1903_p11 = scmp.ne.s32.totalorder %s1901_s25, %s1902_s24  ;;  %p1908_p1 = scmp.lt.s32.totalorder %s1906_s28, %s1902_s24 }
  0x4b   : > { %v1701_v16 = vor.u32 %v1794_v14, %v1700_v13  ;;  %v1616_v13 = vld [vmem:[%s2658_s1 + $0x188] sm:$0xf]  ;;  %v1773_v14 = vld [vmem:[%s2658_s1 + $0x190] sm:$0xf0] }
  0x4c   : > { %853 = vmatpush.bf16.msrb.mxu1 %v1637_v35  ;;  %879 = vmatpush.bf16.msrb.mxu2 %v1485_v9  ;;  %v1676_v35 = vld [vmem:[%s2658_s1 + $0x200] sm:$0xf]  ;;  %v1776_v9 = vld [vmem:[%s2658_s1 + $0x1a8] sm:$0xf0]  ;;  %p1904_p12 = pnand %p1903_p11, %p2005_p5  ;;  %p1909_p2 = por %p1908_p1, %p1907_p0 }
  0x4d   : > { %v1629_v10 = vor.u32 %v1776_v9, %v1628_v8 }
  0x4e   : > { %796 = vmatpush.bf16.msrb.mxu3 %v1433_v25  ;;  %825 = vmatpush.bf16.msrb.mxu0 %v1529_v27  ;;  %v1791_v25 = vld [vmem:[%s2658_s1 + $0x220] sm:$0xf0]  ;;  %p1905_p13 = pneg %p1904_p12 }
  0x4f   : > { %v1689_v27 = vor.u32 %v1791_v25, %v1688_v22 }
  0x50   : > { %854 = vmatpush.bf16.msrb.mxu1 %v1625_v44  ;;  %880 = vmatpush.bf16.msrb.mxu2 %v1473_v20  ;;  %v1664_v44 = vld [vmem:[%s2658_s1 + $0x1e8] sm:$0xf]  ;;  %p1910_p3 = pnand %p1909_p2, %p1905_p13 }
  0x52   : > { %797 = vmatpush.bf16.msrb.mxu3 %v1421_v36  ;;  %826 = vmatpush.bf16.msrb.mxu0 %v1517_v37  ;;  %v1788_v36 = vld [vmem:[%s2658_s1 + $0x208] sm:$0xf0]  ;;  %v1557_v37 = vor.u32 %v1758_v34, %v1556_v32 }
  0x53   : > { %v1677_v38 = vor.u32 %v1788_v36, %v1676_v35 }
  0x54   : > { %855 = vmatpush.bf16.msrb.mxu1 %v1613_v49  ;;  %881 = vmatpush.bf16.msrb.mxu2 %v1461_v33  ;;  %v1665_v49 = vor.u32 %v1785_v45, %v1664_v44 }
  0x55   : > { %798 = vmatmul.bf16.vlgmr.msrb.gmra.mxu3 %v2189_v23  ;;  %827 = vmatmul.bf16.vlgmr.msrb.gmra.mxu0 %v2202_v28 }
  0x56   : > { %906 = vmatpush.bf16.msra.mxu3 %v1605_v61  ;;  %935 = vmatpush.bf16.msra.mxu0 %v1701_v16  ;;  %v1424_v61 = vld [vmem:[%s2658_s1 + $0x8] sm:$0xf] }
  0x57   : > { %750 = vmatmul.bf16.gmra.mxu1 %v2354_v47  ;;  %779 = vmatmul.bf16.gmra.mxu2 %v2356_v48  ;;  %v1425_v0 = vor.u32 %v1725_v62, %v1424_v61 }
  0x58   : > { %882 = vmatpush.bf16.msrb.mxu2 %v1449_v42 }
  0x5a   : > { %907 = vmatpush.bf16.msra.mxu3 %v1593_v3  ;;  %936 = vmatpush.bf16.msra.mxu0 %v1689_v27  ;;  %v1779_v3 = vld [vmem:[%s2658_s1 + $0x1c0] sm:$0xf0] }
  0x5b   : > { %v1641_v5 = vor.u32 %v1779_v3, %v1640_v2 }
  0x5c   : > { %883 = vmatpush.bf16.msrb.mxu2 %v1437_v53 }
  0x5e   : > { %908 = vmatpush.bf16.msra.mxu3 %v1581_v15  ;;  %937 = vmatpush.bf16.msra.mxu0 %v1677_v38  ;;  %v1617_v15 = vor.u32 %v1773_v14, %v1616_v13 }
  0x60   : > { %884 = vmatpush.bf16.msrb.mxu2 %v1425_v0 }
  0x62   : > { %909 = vmatpush.bf16.msra.mxu3 %v1569_v26  ;;  %938 = vmatpush.bf16.msra.mxu0 %v1665_v49 }
  0x65   : > { %803 = vmatmul.bf16.gmra.mxu3 %v2281_v6  ;;  %832 = vmatmul.bf16.gmra.mxu0 %v2294_v11 }
  0x66   : > { %910 = vmatpush.bf16.msra.mxu3 %v1557_v37  ;;  %939 = vmatpush.bf16.msra.mxu0 %v1653_v60 }
  0x67   : > { %755 = vmatmul.bf16.gmra.mxu1 %v2366_v54  ;;  %784 = vmatmul.bf16.gmra.mxu2 %v2368_v55 }
  0x6a   : > { %911 = vmatpush.bf16.msra.mxu3 %v1545_v46  ;;  %940 = vmatpush.bf16.msra.mxu0 %v1641_v5 }
  0x6e   : > { %912 = vmatpush.bf16.msra.mxu3 %v1533_v59  ;;  %941 = vmatpush.bf16.msra.mxu0 %v1629_v10 }
  0x72   : > { %913 = vmatpush.bf16.msra.mxu3 %v1521_v4  ;;  %942 = vmatpush.bf16.msra.mxu0 %v1617_v15 }
  0x75   : > { %808 = vmatmul.bf16.gmra.mxu3 %v2191_v24  ;;  %837 = vmatmul.bf16.gmra.mxu0 %v2354_v47 }
  0x77   : > { %856 = vmatmul.bf16.vlgmr.msrb.gmra.mxu1 %v2204_v29  ;;  %885 = vmatmul.bf16.vlgmr.msrb.gmra.mxu2 %v2189_v23 }
  0x85   : > { %813 = vmatmul.bf16.gmra.mxu3 %v2283_v7  ;;  %842 = vmatmul.bf16.gmra.mxu0 %v2366_v54 }
  0x87   : > { %861 = vmatmul.bf16.gmra.mxu1 %v2296_v12  ;;  %890 = vmatmul.bf16.gmra.mxu2 %v2281_v6 }
  0x95   : > { %914 = vmatmul.bf16.vlgmr.msra.gmra.mxu3 %v2202_v28  ;;  %943 = vmatmul.bf16.vlgmr.msra.gmra.mxu0 %v2204_v29 }
  0x97   : > { %866 = vmatmul.bf16.gmra.mxu1 %v2356_v48  ;;  %895 = vmatmul.bf16.gmra.mxu2 %v2191_v24 }
  0xa5   : > { %919 = vmatmul.bf16.gmra.mxu3 %v2294_v11  ;;  %948 = vmatmul.bf16.gmra.mxu0 %v2296_v12 }
  0xa7   : > { %871 = vmatmul.bf16.gmra.mxu1 %v2368_v55  ;;  %900 = vmatmul.bf16.gmra.mxu2 %v2283_v7 }
  0xb2   : > { %v712_v16 = vpop.f32.mrf.mxu0 }
  0xb4   : > { %v741_v17 = vpop.f32.mrf.mxu1 }
  0xb5   : > { %v742_v18 = vadd.f32 %v741_v17, %v712_v16  ;;  %924 = vmatmul.bf16.gmra.mxu3 %v2354_v47  ;;  %953 = vmatmul.bf16.gmra.mxu0 %v2356_v48 }
  0xb8   : > { %v722_v23 = vpop.f32.mrf.mxu3 }
  0xba   : > { %v770_v28 = vpop.f32.mrf.mxu2  ;;  %v714_v20 = vpop.f32.mrf.mxu0 }
  0xbb   : > { %v771_v19 = vadd.f32 %v770_v28, %v742_v18 }
  0xbc   : > { %v743_v21 = vpop.f32.mrf.mxu1 }
  0xbd   : > { %v744_v22 = vadd.f32 %v743_v21, %v714_v20  ;;  %v964_v27 = vpack.c.bf16 %v771_v19, %v771_v19 }
  0xbf   : > { %v2532_v34 = vunpack.c.l.b16 %v964_v27 }
  0xc0   : > { %v724_v25 = vpop.f32.mrf.mxu3 }
  0xc2   : > { %v772_v26 = vpop.f32.mrf.mxu2  ;;  %v717_v29 = vpop.f32.mrf.mxu0 }
  0xc3   : > { %v773_v30 = vadd.f32 %v772_v26, %v744_v22 }
  0xc4   : > { %v746_v31 = vpop.f32.mrf.mxu1 }
  0xc5   : > { %v965_v32 = vpack.c.bf16 %v773_v30, %v773_v30  ;;  %v747_v33 = vadd.f32 %v746_v31, %v717_v29  ;;  %929 = vmatmul.bf16.gmra.mxu3 %v2366_v54  ;;  %958 = vmatmul.bf16.gmra.mxu0 %v2368_v55 }
  0xc7   : > { %v2534_v6 = vunpack.c.l.b16 %v965_v32 }
  0xc8   : > { %v727_v35 = vpop.f32.mrf.mxu3 }
  0xc9   : > { %v1004_v11 = vpack.c.b16 %v2534_v6, %v2532_v34 }
  0xca   : > { %v775_v12 = vpop.f32.mrf.mxu2  ;;  %v719_v37 = vpop.f32.mrf.mxu0 }
  0xcb   : > { %v776_v36 = vadd.f32 %v775_v12, %v747_v33 }
  0xcc   : > { %v748_v38 = vpop.f32.mrf.mxu1 }
  0xcd   : > { %v749_v39 = vadd.f32 %v748_v38, %v719_v37  ;;  %v966_v42 = vpack.c.bf16 %v776_v36, %v776_v36 }
  0xcf   : > { %v2541_v49 = vunpack.c.l.b16 %v966_v42 }
  0xd0   : > { %v729_v40 = vpop.f32.mrf.mxu3 }
  0xd2   : > { %v777_v41 = vpop.f32.mrf.mxu2  ;;  %v828_v46 = vpop.f32.mrf.mxu0 }
  0xd3   : > { %v778_v43 = vadd.f32 %v777_v41, %v749_v39 }
  0xd4   : > { %v751_v44 = vpop.f32.mrf.mxu1 }
  0xd5   : > { %v967_v45 = vpack.c.bf16 %v778_v43, %v778_v43  ;;  %v752_v24 = vadd.f32 %v751_v44, %v722_v23 }
  0xd7   : > { %v2543_v50 = vunpack.c.l.b16 %v967_v45 }
  0xd8   : > { %v799_v51 = vpop.f32.mrf.mxu3 }
  0xd9   : > { %v1005_v47 = vpack.c.b16 %v2543_v50, %v2541_v49  ;;  %v829_v52 = vadd.f32 %v828_v46, %v799_v51 }
  0xda   : > { %v780_v48 = vpop.f32.mrf.mxu2  ;;  %v830_v58 = vpop.f32.mrf.mxu0 }
  0xdb   : > { %v781_v53 = vadd.f32 %v780_v48, %v752_v24 }
  0xdc   : > { %v753_v56 = vpop.f32.mrf.mxu1 }
  0xdd   : > { %v754_v57 = vadd.f32 %v753_v56, %v724_v25  ;;  %v968_v62 = vpack.c.bf16 %v781_v53, %v781_v53 }
  0xdf   : > { %v2550_v2 = vunpack.c.l.b16 %v968_v62 }
  0xe0   : > { %v801_v59 = vpop.f32.mrf.mxu3 }
  0xe1   : > { %v831_v61 = vadd.f32 %v830_v58, %v801_v59 }
  0xe2   : > { %v782_v60 = vpop.f32.mrf.mxu2  ;;  %v833_v16 = vpop.f32.mrf.mxu0 }
  0xe3   : > { %v783_v63 = vadd.f32 %v782_v60, %v754_v57 }
  0xe4   : > { %v756_v7 = vpop.f32.mrf.mxu1 }
  0xe5   : > { %v969_v0 = vpack.c.bf16 %v783_v63, %v783_v63  ;;  %v757_v1 = vadd.f32 %v756_v7, %v727_v35 }
  0xe7   : > { %v2552_v3 = vunpack.c.l.b16 %v969_v0 }
  0xe8   : > { %v804_v55 = vpop.f32.mrf.mxu3 }
  0xe9   : > { %v1006_v54 = vpack.c.b16 %v2552_v3, %v2550_v2 }
  0xea   : > { %v785_v4 = vpop.f32.mrf.mxu2  ;;  %v835_v26 = vpop.f32.mrf.mxu0 }
  0xeb   : > { %v786_v5 = vadd.f32 %v785_v4, %v757_v1 }
  0xec   : > { %v758_v8 = vpop.f32.mrf.mxu1 }
  0xed   : > { %v759_v9 = vadd.f32 %v758_v8, %v729_v40  ;;  %v970_v13 = vpack.c.bf16 %v786_v5, %v786_v5  ;;  %v834_v8 = vadd.f32 %v833_v16, %v804_v55 }
  0xef   : > { %v2556_v23 = vunpack.c.l.b16 %v970_v13 }
  0xf0   : > { %v806_v21 = vpop.f32.mrf.mxu3 }
  0xf2   : > { %v787_v10 = vpop.f32.mrf.mxu2  ;;  %v838_v35 = vpop.f32.mrf.mxu0 }
  0xf3   : > { %v788_v14 = vadd.f32 %v787_v10, %v759_v9  ;;  %v836_v9 = vadd.f32 %v835_v26, %v806_v21 }
  0xf4   : > { %v857_v15 = vpop.f32.mrf.mxu1 }
  0xf5   : > { %v971_v17 = vpack.c.bf16 %v788_v14, %v788_v14  ;;  %v858_v18 = vadd.f32 %v857_v15, %v829_v52 }
  0xf7   : > { %v2558_v28 = vunpack.c.l.b16 %v971_v17  ;;  %v972_v22 = vpack.c.bf16 %v858_v18, %v858_v18 }
  0xf8   : > { %v809_v33 = vpop.f32.mrf.mxu3 }
  0xf9   : > { %v1007_v19 = vpack.c.b16 %v2558_v28, %v2556_v23  ;;  %v1020_v30 = vunpack.c.l.b16 %v972_v22  ;;  %v839_v53 = vadd.f32 %v838_v35, %v809_v33 }
  0xfa   : > { %v840_v37 = vpop.f32.mrf.mxu0  ;;  %v886_v51 = vpop.f32.mrf.mxu2 }
  0xfc   : > { %v859_v20 = vpop.f32.mrf.mxu1 }
  0xfd   : > { %v860_v25 = vadd.f32 %v859_v20, %v831_v61 }
  0xff   : > { %v973_v27 = vpack.c.bf16 %v860_v25, %v860_v25 }
 0x100   : > { %v811_v36 = vpop.f32.mrf.mxu3 }
 0x101   : > { %v1021_v29 = vunpack.c.l.b16 %v973_v27  ;;  %v841_v56 = vadd.f32 %v840_v37, %v811_v36 }
 0x102   : > { %v843_v40 = vpop.f32.mrf.mxu0  ;;  %v888_v4 = vpop.f32.mrf.mxu2 }
 0x103   : > { %v2562_v31 = vpack.c.b16 %v1021_v29, %v1020_v30 }
 0x104   : > { %v862_v32 = vpop.f32.mrf.mxu1 }
 0x105   : > { %v863_v17 = vadd.f32 %v862_v32, %v834_v8 }
 0x107   : > { %v974_v30 = vpack.c.bf16 %v863_v17, %v863_v17 }
 0x108   : > { %v814_v39 = vpop.f32.mrf.mxu3 }
 0x109   : > { %v844_v44 = vadd.f32 %v843_v40, %v814_v39  ;;  %v1022_v35 = vunpack.c.l.b16 %v974_v30 }
 0x10a   : > { %v845_v45 = vpop.f32.mrf.mxu0  ;;  %v891_v25 = vpop.f32.mrf.mxu2 }
 0x10c   : > { %v864_v12 = vpop.f32.mrf.mxu1 }
 0x10d   : > { %v865_v14 = vadd.f32 %v864_v12, %v836_v9 }
 0x10f   : > { %v975_v20 = vpack.c.bf16 %v865_v14, %v865_v14 }
 0x110   : > { %v816_v42 = vpop.f32.mrf.mxu3 }
 0x111   : > { %v846_v46 = vadd.f32 %v845_v45, %v816_v42  ;;  %v1023_v33 = vunpack.c.l.b16 %v975_v20 }
 0x112   : > { %v944_v59 = vpop.f32.mrf.mxu0  ;;  %v893_v16 = vpop.f32.mrf.mxu2 }
 0x113   : > { %v1029_v55 = vpack.c.b16 %v1023_v33, %v1022_v35 }
 0x114   : > { %v867_v38 = vpop.f32.mrf.mxu1 }
 0x115   : > { %v868_v62 = vadd.f32 %v867_v38, %v839_v53 }
 0x117   : > { %v976_v10 = vpack.c.bf16 %v868_v62, %v868_v62 }
 0x118   : > { %v915_v52 = vpop.f32.mrf.mxu3 }
 0x119   : > { %v1024_v18 = vunpack.c.l.b16 %v976_v10  ;;  %v916_v21 = vadd.f32 %v915_v52, %v886_v51 }
 0x11a   : > { %v946_v13 = vpop.f32.mrf.mxu0  ;;  %v896_v32 = vpop.f32.mrf.mxu2 }
 0x11b   : > { %v945_v12 = vadd.f32 %v944_v59, %v916_v21 }
 0x11c   : > { %v869_v41 = vpop.f32.mrf.mxu1 }
 0x11d   : > { %v870_v60 = vadd.f32 %v869_v41, %v841_v56  ;;  %v980_v3 = vpack.c.bf16 %v945_v12, %v945_v12 }
 0x11f   : > { %v977_v0 = vpack.c.bf16 %v870_v60, %v870_v60 }
 0x120   : > { %v917_v5 = vpop.f32.mrf.mxu3 }
 0x121   : > { %v1025_v15 = vunpack.c.l.b16 %v977_v0  ;;  %v918_v49 = vadd.f32 %v917_v5, %v888_v4  ;;  %v1201_v5 = vunpack.c.l.b16 %v980_v3 }
 0x122   : > { %v949_v29 = vpop.f32.mrf.mxu0  ;;  %v898_v39 = vpop.f32.mrf.mxu2 }
 0x123   : > { %v1030_v22 = vpack.c.b16 %v1025_v15, %v1024_v18  ;;  %v1065_v18 = vlaneseq }
 0x124   : > { %v872_v43 = vpop.f32.mrf.mxu1 }
 0x125   : > { %v873_v24 = vadd.f32 %v872_v43, %v844_v44  ;;  %v1066_v20 = vshrl.u32 %v1065_v18, 7 }
 0x127   : > { %v978_v57 = vpack.c.bf16 %v873_v24, %v873_v24  ;;  %v1067_v28 = vadd.s32 8, %v1066_v20 }
 0x128   : > { %v920_v27 = vpop.f32.mrf.mxu3 }
 0x129   : > { %v1026_v63 = vunpack.c.l.b16 %v978_v57 }
 0x12a   : > { %v951_v36 = vpop.f32.mrf.mxu0  ;;  %v901_v42 = vpop.f32.mrf.mxu2 }
 0x12c   : > { %v874_v48 = vpop.f32.mrf.mxu1 }
 0x12d   : > { %v875_v58 = vadd.f32 %v874_v48, %v846_v46 }
 0x12f   : > { %v979_v61 = vpack.c.bf16 %v875_v58, %v875_v58 }
 0x130   : > { %v922_v26 = vpop.f32.mrf.mxu3 }
 0x131   : > { %v1027_v7 = vunpack.c.l.b16 %v979_v61  ;;  %v923_v48 = vadd.f32 %v922_v26, %v893_v16 }
 0x132   : > { %v954_v38 = vpop.f32.mrf.mxu0  ;;  %v903_v56 = vpop.f32.mrf.mxu2 }
 0x133   : > { %v1031_v1 = vpack.c.b16 %v1027_v7, %v1026_v63  ;;  %v952_v57 = vadd.f32 %v951_v36, %v923_v48  ;;  %v947_v63 = vadd.f32 %v946_v13, %v918_v49 }
 0x135   : > { %1040 = vmatpush.bf16.xpose.msrb.mxu0 %v1031_v1  ;;  %1804 = vmatpush.bf16.xpose.msra.mxu1 %v1031_v1  ;;  %v983_v0 = vpack.c.bf16 %v952_v57, %v952_v57 }
 0x137   : > { %v1204_v14 = vunpack.c.l.b16 %v983_v0 }
 0x138   : > { %v925_v37 = vpop.f32.mrf.mxu3 }
 0x139   : > { %v926_v24 = vadd.f32 %v925_v37, %v896_v32  ;;  %v1070_v32 = vadd.s32 32, %v1066_v20 }
 0x13a   : > { %v956_v41 = vpop.f32.mrf.mxu0 }
 0x13b   : > { %v955_v52 = vadd.f32 %v954_v38, %v926_v24 }
 0x13d   : > { %1041 = vmatpush.bf16.xpose.msrb.mxu0 %v1030_v22  ;;  %1805 = vmatpush.bf16.xpose.msra.mxu1 %v1030_v22  ;;  %v984_v58 = vpack.c.bf16 %v955_v52, %v955_v52  ;;  %v1075_v22 = vand.u32 127, %v1065_v18 }
 0x13f   : > { %v1205_v1 = vunpack.c.l.b16 %v984_v58  ;;  %vm1076_vm0 = vcmp.le.s32.totalorder %v1075_v22, %v1066_v20  ;;  %vm1077_vm3 = vcmp.le.s32.totalorder %v1075_v22, %v1067_v28  ;;  %vm1080_vm5 = vcmp.le.s32.totalorder %v1075_v22, %v1070_v32 }
 0x140   : > { %v927_v40 = vpop.f32.mrf.mxu3 }
 0x141   : > { %v928_v46 = vadd.f32 %v927_v40, %v898_v39  ;;  %v1071_v40 = vadd.s32 40, %v1066_v20 }
 0x142   : > { %v959_v45 = vpop.f32.mrf.mxu0 }
 0x143   : > { %v957_v53 = vadd.f32 %v956_v41, %v928_v46  ;;  %vm1081_vm6 = vcmp.le.s32.totalorder %v1075_v22, %v1071_v40 }
 0x145   : > { %1042 = vmatpush.bf16.xpose.msrb.mxu0 %v1029_v55  ;;  %1806 = vmatpush.bf16.xpose.msra.mxu1 %v1029_v55  ;;  %v985_v59 = vpack.c.bf16 %v957_v53, %v957_v53 }
 0x147   : > { %v1206_v8 = vunpack.c.l.b16 %v985_v59 }
 0x148   : > { %v930_v43 = vpop.f32.mrf.mxu3 }
 0x149   : > { %v931_v44 = vadd.f32 %v930_v43, %v901_v42  ;;  %v1211_v4 = vpack.c.b16 %v1206_v8, %v1205_v1 }
 0x14b   : > { %v960_v51 = vadd.f32 %v959_v45, %v931_v44  ;;  %v1072_v44 = vadd.s32 48, %v1066_v20 }
 0x14d   : > { %1043 = vmatpush.bf16.xpose.msrb.mxu0 %v2562_v31  ;;  %1807 = vmatpush.bf16.xpose.msra.mxu1 %v2562_v31  ;;  %v921_v31 = vadd.f32 %v920_v27, %v891_v25  ;;  %v986_v6 = vpack.c.bf16 %v960_v51, %v960_v51  ;;  %v1068_v25 = vadd.s32 16, %v1066_v20  ;;  %vm1082_vm7 = vcmp.le.s32.totalorder %v1075_v22, %v1072_v44 }
 0x14e   : > { %v1073_v51 = vadd.s32 56, %v1066_v20 }
 0x14f   : > { %v950_v50 = vadd.f32 %v949_v29, %v921_v31  ;;  %v1207_v61 = vunpack.c.l.b16 %v986_v6  ;;  %vm1078_vm1 = vcmp.le.s32.totalorder %v1075_v22, %v1068_v25 }
 0x150   : > { %v932_v34 = vpop.f32.mrf.mxu3  ;;  %vm1083_vm8 = vcmp.le.s32.totalorder %v1075_v22, %v1073_v51 }
 0x151   : > { %v982_v7 = vpack.c.bf16 %v950_v50, %v950_v50 }
 0x153   : > { %v1203_v10 = vunpack.c.l.b16 %v982_v7 }
 0x154   : > { %1044 = vmatmul.bf16.vlgmr.msrb.gmra.mxu0 %v1004_v11  ;;  %1049 = vmatmul.bf16.vlgmr.msra.gmra.mxu1 %v1005_v47  ;;  %v933_v11 = vadd.f32 %v932_v34, %v903_v56  ;;  %v961_v47 = vpop.f32.mrf.mxu0 }
 0x155   : > { %v1210_v17 = vpack.c.b16 %v1204_v14, %v1203_v10 }
 0x156   : > { %v962_v60 = vadd.f32 %v961_v47, %v933_v11 }
 0x158   : > { %v987_v62 = vpack.c.bf16 %v962_v60, %v962_v60 }
 0x15a   : > { %v1208_v9 = vunpack.c.l.b16 %v987_v62 }
 0x15c   : > { %v1212_v2 = vpack.c.b16 %v1208_v9, %v1207_v61 }
 0x15e   : > { %1233 = vmatpush.bf16.msra.mxu2 %v1212_v2  ;;  %1808 = vmatpush.bf16.msrb.mxu3 %v1212_v2 }
 0x162   : > { %1234 = vmatpush.bf16.msra.mxu2 %v1211_v4  ;;  %1809 = vmatpush.bf16.msrb.mxu3 %v1211_v4 }
 0x164   : > { %1054 = vmatmul.bf16.gmra.mxu1 %v1006_v54  ;;  %v981_v54 = vpack.c.bf16 %v947_v63, %v947_v63 }
 0x166   : > { %v1202_v15 = vunpack.c.l.b16 %v981_v54  ;;  %1235 = vmatpush.bf16.msra.mxu2 %v1210_v17  ;;  %1810 = vmatpush.bf16.msrb.mxu3 %v1210_v17 }
 0x168   : > { %v1209_v13 = vpack.c.b16 %v1202_v15, %v1201_v5 }
 0x16a   : > { %1236 = vmatpush.bf16.msra.mxu2 %v1209_v13  ;;  %1811 = vmatpush.bf16.msrb.mxu3 %v1209_v13 }
 0x174   : > { %1059 = vmatmul.bf16.gmra.mxu1 %v1007_v19  ;;  %v1069_v19 = vadd.s32 24, %v1066_v20 }
 0x176   : > { %vm1079_vm4 = vcmp.le.s32.totalorder %v1075_v22, %v1069_v19 }
 0x1d1   : > { %v1045_v27 = vpop.f32.mrf.mxu0  ;;  %v1050_v30 = vpop.f32.mrf.mxu1 }
 0x1d2   : > { %v1084_v29 = vsel %vm1076_vm0, %v1045_v27, -inf  ;;  %v1086_v33 = vsel %vm1078_vm1, %v1050_v30, -inf }
 0x1d3   : > { %v1099_v35 = vsel %vm1092_vm2, %v1086_v33, -inf  ;;  %v1093_v23 = vsel %vm1092_vm2, %v1084_v29, -inf }
 0x1d4   : > { %1100 = vmax.xlane.f32.xlu1 %v1099_v35  ;;  %1094 = vmax.xlane.f32.xlu0 %v1093_v23 }
 0x1d9   : > { %v1047_v55 = vpop.f32.mrf.mxu0  ;;  %v1052_v16 = vpop.f32.mrf.mxu1 }
 0x1da   : > { %v1085_v21 = vsel %vm1077_vm3, %v1047_v55, -inf  ;;  %v1087_v26 = vsel %vm1079_vm4, %v1052_v16, -inf }
 0x1db   : > { %v1102_v12 = vsel %vm1092_vm2, %v1087_v26, -inf  ;;  %v1096_v36 = vsel %vm1092_vm2, %v1085_v21, -inf }
 0x1dc   : > { %1103 = vmax.xlane.f32.xlu1 %v1102_v12  ;;  %1097 = vmax.xlane.f32.xlu0 %v1096_v36 }
 0x1e1   : > { %v1055_v37 = vpop.f32.mrf.mxu1 }
 0x1e2   : > { %v1088_v38 = vsel %vm1080_vm5, %v1055_v37, -inf }
 0x1e3   : > { %v1105_v39 = vsel %vm1092_vm2, %v1088_v38, -inf }
 0x1e4   : > { %1106 = vmax.xlane.f32.xlu2 %v1105_v39 }
 0x1e9   : > { %v1057_v41 = vpop.f32.mrf.mxu1 }
 0x1ea   : > { %v1089_v42 = vsel %vm1081_vm6, %v1057_v41, -inf }
 0x1eb   : > { %v1108_v43 = vsel %vm1092_vm2, %v1089_v42, -inf }
 0x1ec   : > { %1109 = vmax.xlane.f32.xlu2 %v1108_v43 }
 0x1f1   : > { %v1060_v45 = vpop.f32.mrf.mxu1 }
 0x1f2   : > { %v1090_v24 = vsel %vm1082_vm7, %v1060_v45, -inf }
 0x1f3   : > { %v1111_v46 = vsel %vm1092_vm2, %v1090_v24, -inf }
 0x1f4   : > { %1112 = vmax.xlane.f32.xlu0 %v1111_v46 }
 0x1f9   : > { %v1062_v31 = vpop.f32.mrf.mxu1 }
 0x1fa   : > { %v2585_v48 = vsel %vm1083_vm8, %v1062_v31, -inf }
 0x1fb   : > { %v1114_v52 = vsel %vm1092_vm2, %v2585_v48, -inf }
 0x1fc   : > { %1115 = vmax.xlane.f32.xlu1 %v1114_v52 }
 0x247   : > { %v1101_v53 = vpop.xlane.xlu1 %1100  ;;  %v1095_v56 = vpop.xlane.xlu0 %1094 }
 0x248   : > { %v1119_v34 = vsub.f32 %v1086_v33, %v1101_v53  ;;  %v1117_v6 = vsub.f32 %v1084_v29, %v1095_v56 }
 0x24a   : > { %v1129_v11 = vmul.f32 1.442695, %v1119_v34  ;;  %v1125_v49 = vmul.f32 1.442695, %v1117_v6 }
 0x24c   : > { %1854 = vpow2.f32 %v1129_v11 }
 0x24d   : > { %1856 = vpow2.f32 %v1125_v49 }
 0x24f   : > { %v1104_v50 = vpop.xlane.xlu1 %1103  ;;  %v1098_v47 = vpop.xlane.xlu0 %1097 }
 0x250   : > { %v1120_v57 = vsub.f32 %v1087_v26, %v1104_v50  ;;  %v1118_v58 = vsub.f32 %v1085_v21, %v1098_v47 }
 0x252   : > { %v1855_v59 = vpop.eup %1854  ;;  %v1131_v60 = vmul.f32 1.442695, %v1120_v57  ;;  %v1127_v61 = vmul.f32 1.442695, %v1118_v58 }
 0x253   : > { %v1857_v62 = vpop.eup %1856  ;;  %v1147_v63 = vsel %vm1092_vm2, %v1855_v59, 0.0  ;;  %v1167_v35 = vpack.c.bf16 %v1855_v59, %v1855_v59 }
 0x254   : > { %1858 = vpow2.f32 %v1131_v60  ;;  %1148 = vadd.xlane.f32.xlu1 %v1147_v63  ;;  %v1141_v7 = vsel %vm1092_vm2, %v1857_v62, 0.0  ;;  %v1165_v9 = vpack.c.bf16 %v1857_v62, %v1857_v62 }
 0x255   : > { %1860 = vpow2.f32 %v1127_v61  ;;  %1142 = vadd.xlane.f32.xlu2 %v1141_v7  ;;  %v1183_v19 = vunpack.c.l.b16 %v1167_v35 }
 0x256   : > { %v1181_v4 = vunpack.c.l.b16 %v1165_v9 }
 0x257   : > { %v1107_v0 = vpop.xlane.xlu2 %1106 }
 0x258   : > { %v1121_v1 = vsub.f32 %v1088_v38, %v1107_v0 }
 0x25a   : > { %v1859_v8 = vpop.eup %1858  ;;  %v1133_v2 = vmul.f32 1.442695, %v1121_v1 }
 0x25b   : > { %v1861_v3 = vpop.eup %1860  ;;  %v1150_v54 = vsel %vm1092_vm2, %v1859_v8, 0.0  ;;  %v1168_v30 = vpack.c.bf16 %v1859_v8, %v1859_v8 }
 0x25c   : > { %v1166_v10 = vpack.c.bf16 %v1861_v3, %v1861_v3  ;;  %1862 = vpow2.f32 %v1133_v2  ;;  %v1144_v14 = vsel %vm1092_vm2, %v1861_v3, 0.0 }
 0x25d   : > { %1151 = vadd.xlane.f32.xlu2 %v1150_v54  ;;  %1145 = vadd.xlane.f32.xlu0 %v1144_v14  ;;  %v1184_v28 = vunpack.c.l.b16 %v1168_v30 }
 0x25e   : > { %v1182_v5 = vunpack.c.l.b16 %v1166_v10 }
 0x25f   : > { %v1110_v15 = vpop.xlane.xlu2 %1109  ;;  %v1190_v21 = vpack.c.b16 %v1184_v28, %v1183_v19 }
 0x260   : > { %v1189_v17 = vpack.c.b16 %v1182_v5, %v1181_v4  ;;  %v1122_v13 = vsub.f32 %v1089_v42, %v1110_v15 }
 0x262   : > { %v1863_v18 = vpop.eup %1862  ;;  %v1135_v20 = vmul.f32 1.442695, %v1122_v13  ;;  %1702 = vmatmul.msk.bf16.vlgmr.msra.gmra.mxu2 %vm1092_vm2, %v1189_v17 }
 0x263   : > { %v1153_v22 = vsel %vm1092_vm2, %v1863_v18, 0.0  ;;  %v1169_v39 = vpack.c.bf16 %v1863_v18, %v1863_v18 }
 0x264   : > { %1864 = vpow2.f32 %v1135_v20 }
 0x265   : > { %1154 = vadd.xlane.f32.xlu0 %v1153_v22  ;;  %v1185_v45 = vunpack.c.l.b16 %v1169_v39 }
 0x267   : > { %v1113_v25 = vpop.xlane.xlu0 %1112 }
 0x268   : > { %v1123_v27 = vsub.f32 %v1090_v24, %v1113_v25 }
 0x26a   : > { %v1865_v29 = vpop.eup %1864  ;;  %v1137_v33 = vmul.f32 1.442695, %v1123_v27 }
 0x26b   : > { %v1156_v23 = vsel %vm1092_vm2, %v1865_v29, 0.0  ;;  %v1170_v32 = vpack.c.bf16 %v1865_v29, %v1865_v29 }
 0x26c   : > { %1866 = vpow2.f32 %v1137_v33  ;;  %1157 = vadd.xlane.f32.xlu1 %v1156_v23 }
 0x26d   : > { %v1186_v42 = vunpack.c.l.b16 %v1170_v32 }
 0x26f   : > { %v1116_v55 = vpop.xlane.xlu1 %1115  ;;  %v1191_v46 = vpack.c.b16 %v1186_v42, %v1185_v45 }
 0x270   : > { %v1124_v16 = vsub.f32 %v2585_v48, %v1116_v55 }
 0x272   : > { %v1867_v26 = vpop.eup %1866  ;;  %v1139_v12 = vmul.f32 1.442695, %v1124_v16  ;;  %1703 = vmatmul.msk.bf16.gmra.mxu2 %vm1092_vm2, %v1190_v21 }
 0x273   : > { %v1159_v36 = vsel %vm1092_vm2, %v1867_v26, 0.0  ;;  %v1171_v37 = vpack.c.bf16 %v1867_v26, %v1867_v26 }
 0x274   : > { %1868 = vpow2.f32 %v1139_v12  ;;  %1160 = vadd.xlane.f32.xlu2 %v1159_v36 }
 0x275   : > { %v1187_v43 = vunpack.c.l.b16 %v1171_v37 }
 0x27a   : > { %v1869_v38 = vpop.eup %1868 }
 0x27b   : > { %v1172_v40 = vpack.c.bf16 %v1869_v38, %v1869_v38  ;;  %v1162_v41 = vsel %vm1092_vm2, %v1869_v38, 0.0 }
 0x27c   : > { %1163 = vadd.xlane.f32.xlu0 %v1162_v41 }
 0x27d   : > { %v1188_v44 = vunpack.c.l.b16 %v1172_v40 }
 0x27f   : > { %v1192_v24 = vpack.c.b16 %v1188_v44, %v1187_v43 }
 0x281   : > { %1705 = vmatmul.msk.bf16.vlgmr.msrb.gmra.mxu3 %vm1092_vm2, %v1192_v24 }
 0x282   : > { %1704 = vmatmul.msk.bf16.gmra.mxu2 %vm1092_vm2, %v1191_v46 }
 0x2c7   : > { %v1149_v56 = vpop.xlane.xlu1 %1148 }
 0x2c8   : > { %v1143_v51 = vpop.xlane.xlu2 %1142 }
 0x2c9   : > { %1870 = vrcp.f32 %v1143_v51 }
 0x2cf   : > { %v1871_v48 = vpop.eup %1870 }
 0x2d0   : > { %v1146_v31 = vpop.xlane.xlu0 %1145  ;;  %v1152_v49 = vpop.xlane.xlu2 %1151 }
 0x2d1   : > { %1872 = vrcp.f32 %v1146_v31 }
 0x2d2   : > { %1874 = vrcp.f32 %v1149_v56 }
 0x2d3   : > { %1876 = vrcp.f32 %v1152_v49 }
 0x2d7   : > { %v1873_v34 = vpop.eup %1872 }
 0x2d8   : > { %v1875_v50 = vpop.eup %1874  ;;  %v1155_v58 = vpop.xlane.xlu0 %1154 }
 0x2d9   : > { %v1877_v60 = vpop.eup %1876 }
 0x2df   : > { %v1158_v0 = vpop.xlane.xlu1 %1157 }
 0x2e5   : > { %v1238_v52 = vpop.f32.mrf.mxu2 }
 0x2e6   : > { %v1266_v53 = vmul.f32 %v1871_v48, %v1238_v52 }
 0x2e7   : > { %v1161_v59 = vpop.xlane.xlu2 %1160 }
 0x2e8   : > { %1274 = vst.msk [vmem:[%s2605_s7] sm:$0xff] %vm1092_vm2, %v1266_v53  ;;  %1878 = vrcp.f32 %v1161_v59 }
 0x2e9   : > { %1880 = vrcp.f32 %v1155_v58 }
 0x2ed   : > { %v1240_v6 = vpop.f32.mrf.mxu2 }
 0x2ee   : > { %v1267_v11 = vmul.f32 %v1873_v34, %v1240_v6  ;;  %v1879_v7 = vpop.eup %1878 }
 0x2ef   : > { %v1164_v63 = vpop.xlane.xlu0 %1163  ;;  %v1881_v8 = vpop.eup %1880 }
 0x2f0   : > { %1275 = vst.msk [vmem:[%s2605_s7 + $0x8] sm:$0xff] %vm1092_vm2, %v1267_v11  ;;  %1882 = vrcp.f32 %v1164_v63 }
 0x2f1   : > { %1884 = vrcp.f32 %v1158_v0 }
 0x2f5   : > { %v1243_v47 = vpop.f32.mrf.mxu2 }
 0x2f6   : > { %v1268_v57 = vmul.f32 %v1875_v50, %v1243_v47  ;;  %v1883_v54 = vpop.eup %1882 }
 0x2f7   : > { %v1885_v14 = vpop.eup %1884 }
 0x2f8   : > { %1276 = vst.msk [vmem:[%s2605_s7 + $0x10] sm:$0xff] %vm1092_vm2, %v1268_v57 }
 0x2fd   : > { %v1245_v61 = vpop.f32.mrf.mxu2 }
 0x2fe   : > { %v1269_v62 = vmul.f32 %v1877_v60, %v1245_v61 }
 0x300   : > { %1277 = vst.msk [vmem:[%s2605_s7 + $0x18] sm:$0xff] %vm1092_vm2, %v1269_v62 }
 0x304   : > { %v1253_v1 = vpop.f32.mrf.mxu3 }
 0x305   : > { %v1248_v9 = vpop.f32.mrf.mxu2  ;;  %v1272_v2 = vmul.f32 %v1879_v7, %v1253_v1 }
 0x306   : > { %v1270_v3 = vmul.f32 %v1881_v8, %v1248_v9 }
 0x307   : > { %1280 = vst.msk [vmem:[%s2605_s7 + $0x30] sm:$0xff] %vm1092_vm2, %v1272_v2 }
 0x308   : > { %1278 = vst.msk [vmem:[%s2605_s7 + $0x20] sm:$0xff] %vm1092_vm2, %v1270_v3 }
 0x30c   : > { %v1255_v10 = vpop.f32.mrf.mxu3 }
 0x30d   : > { %v1250_v4 = vpop.f32.mrf.mxu2  ;;  %v1273_v5 = vmul.f32 %v1883_v54, %v1255_v10 }
 0x30e   : > { %v1271_v15 = vmul.f32 %v1885_v14, %v1250_v4 }
 0x30f   : > { %1281 = vst.msk [vmem:[%s2605_s7 + $0x38] sm:$0xff] %vm1092_vm2, %v1273_v5 }
 0x310   : > { %1279 = vst.msk [vmem:[%s2605_s7 + $0x28] sm:$0xff] %vm1092_vm2, %v1271_v15 }
 0x311   : > { %1913 = shalt.err (!%p1910_p3)
}
 0x312   : > { %s1950_s3 = smov 128   ;;  %s1951_s4 = smov 8  }
 0x313   : > { %1813 = dma.vmem_to_hbm [thread:$0]  (%p2005_p5), %s1296_s22, 1024, %s1298_s23, %s1283_s13, %s1950_s3, %s1950_s3, %s1951_s4  }
 0x314 PF: > { %p1819_p4 = scmp.ge.s32.totalorder %s1948_s12, 2  ;;  %s1312_s17 = sand.u32 1, %s1936_s9  }
 0x315   : > { %s1313_s5 = scalar_lea.sflag [#allocation3], %s1312_s17 }
 0x316   : > { %p1816_p7 = pnand %p1819_p4, %p2009_p6 }
 0x318   : > { %p1817_p8 = pneg %p1816_p7 }
 0x31a   : > { %1931 = dma.done.wait (%p1817_p8), %s1313_s5, 1024  }
 0x31b   : > { %1933 = vsyncadd (%p1817_p8), %s1313_s5, 4294966272  ;;  %p12_p9 = scmp.ge.s32.totalorder %s1992_s15, 4   ;;  %s2662_s9 = smov %s1940_s10 }
 0x31c   : > { %s2663_s10 = smov %s1944_s11  ;;  %s2664_s11 = smov %s2003_s18 }
 0x31d   : > { %s2665_s12 = smov %s1992_s15  ;;  %14 = sbr.rel (!%p12_p9) target bundleno = 3 (0x3), region = 63 }
 0x322   :  { %1319 = vsyncpa [#allocation3], 1 }
 0x323   :  { %1321 = vsyncpa [#allocation3 + $0x1], 1 }

</bundles_post_ra>
